<compile_context>
chip_gen: v7x
topology: tpu7x:2x2x1
jax: 0.10.0
libtpu: 0.0.40
codegen_flags: <defaults>
</compile_context>

<pallas_src>
import jax
import jax.numpy as jnp
from jax.experimental import pallas as pl
from jax.experimental.pallas import tpu as pltpu

_LANE = 128
_SUBLANE = 8
_MAX_TB = 512
_NEG_BIG = -1e30  # bias for padded classes: exp(logit - max) underflows to 0


def _round_up(x, m):
    return ((x + m - 1) // m) * m


def keyval_kernel(pair_ref, w_ref, b_ref, lbl_ref, logits_ref, row_loss_ref):
    # One lane-dense MXU matmul: (tb, 2H) @ (2H, NL_pad) + (1, NL_pad).
    logits = (
        jnp.dot(pair_ref[...], w_ref[...], preferred_element_type=jnp.float32)
        + b_ref[...]
    )                                                       # (tb, NL_pad) f32
    logits_ref[...] = logits

    # Softmax cross-entropy per row. Padded classes carry a -1e30 bias and
    # zero weights, so exp(logits - max) underflows to exactly 0 for them.
    m = jnp.max(logits, axis=-1, keepdims=True)                       # (tb, 1)
    lse = m + jnp.log(jnp.sum(jnp.exp(logits - m), axis=-1, keepdims=True))

    # One-hot gather built in-kernel from the (tb, 1) int32 label tile.
    # Ignored (-100) / padded (-1) labels match no lane -> picked == 0; those
    # rows are masked out in the wrapper.
    lane = jax.lax.broadcasted_iota(jnp.int32, logits.shape, 1)
    onehot = (lane == lbl_ref[...]).astype(jnp.float32)
    picked = jnp.sum(onehot * logits, axis=-1, keepdims=True)          # (tb, 1)

    row_loss_ref[...] = lse - picked                                   # (tb, 1)


def keyval_linking(hidden_state1, hidden_state2, labels, cls_weight, cls_bias):
    """Pallas implementation of KeyValLinking.forward (post-backbone part).

    hidden_state1, hidden_state2 : (B, S, H) float32  (backbone outputs)
    labels                       : (B,)      int32    (-100 => ignored)
    cls_weight                   : (num_labels, 2*H) float32 (torch Linear)
    cls_bias                     : (num_labels,)     float32
    Returns (loss scalar, logits (B, num_labels)).
    """
    B, S, H = hidden_state1.shape
    NL = cls_weight.shape[0]
    NL_pad = _round_up(NL, _LANE)
    H2 = 2 * H

    tb = min(_MAX_TB, _round_up(B, _SUBLANE))
    B_pad = _round_up(B, tb)
    n_tiles = B_pad // tb

    # CLS pooling + concat in the wrapper: only the (B, H) CLS rows are read;
    # the full (B, S, H) hidden states never enter the kernel.
    pooled = jnp.concatenate(
        [hidden_state1[:, 0, :], hidden_state2[:, 0, :]], axis=-1)  # (B, 2H)
    pooled = jnp.pad(pooled.astype(jnp.float32), ((0, B_pad - B), (0, 0)))

    # Linear(2H -> NL) weight, transposed and zero-padded to lane-dense N.
    w = jnp.zeros((H2, NL_pad), jnp.float32).at[:, :NL].set(
        jnp.transpose(cls_weight).astype(jnp.float32))
    # Padded classes get a huge negative bias so they never affect softmax.
    b = jnp.full((1, NL_pad), _NEG_BIG, jnp.float32).at[0, :NL].set(
        cls_bias.astype(jnp.float32))

    labels = labels.astype(jnp.int32)
    valid = labels >= 0                       # CrossEntropyLoss ignore_index
    labels_pad = jnp.pad(labels, (0, B_pad - B), constant_values=-1)[:, None]

    logits_pad, row_loss = pl.pallas_call(
        keyval_kernel,
        out_shape=(
            jax.ShapeDtypeStruct((B_pad, NL_pad), jnp.float32),
            jax.ShapeDtypeStruct((B_pad, 1), jnp.float32),
        ),
        grid=(n_tiles,),
        in_specs=[
            pl.BlockSpec((tb, H2), lambda i: (i, 0)),        # pooled pair
            pl.BlockSpec((H2, NL_pad), lambda i: (0, 0)),    # weight (shared)
            pl.BlockSpec((1, NL_pad), lambda i: (0, 0)),     # bias   (shared)
            pl.BlockSpec((tb, 1), lambda i: (i, 0)),         # labels (int32)
        ],
        out_specs=(
            pl.BlockSpec((tb, NL_pad), lambda i: (i, 0)),    # logits (padded)
            pl.BlockSpec((tb, 1), lambda i: (i, 0)),         # per-row CE terms
        ),
        compiler_params=pltpu.CompilerParams(
            dimension_semantics=("parallel",)),
    )(pooled, w, b, labels_pad)

    logits = logits_pad[:B, :NL]
    valid_f = valid.astype(jnp.float32)
    n_valid = jnp.maximum(jnp.sum(valid_f), 1.0)
    loss = jnp.sum(row_loss[:B, 0] * valid_f) / n_valid  # mean over valid rows
    return loss, logits


def _reference(hidden_state1, hidden_state2, labels, cls_weight, cls_bias):
    p1 = hidden_state1[:, 0]
    p2 = hidden_state2[:, 0]
    pair = jnp.concatenate([p1, p2], axis=-1)
    logits = pair @ cls_weight.T + cls_bias
    logz = jax.nn.logsumexp(logits, axis=-1)
    picked = jnp.take_along_axis(logits, labels[:, None], axis=-1)[:, 0]
    loss = jnp.mean(logz - picked)
    return loss, logits


if __name__ == "__main__":
    # Small shapes consistent with the module: two encoder outputs (B, S, H),
    # labels (B,), classifier over 2*H features into 2 classes.
    B, S, H = 2, 8, 32
    NUM_LABELS = 2

    key = jax.random.PRNGKey(0)
    k1, k2, k3, k4, k5 = jax.random.split(key, 5)

    hidden_state1 = jax.random.normal(k1, (B, S, H), dtype=jnp.float32)
    hidden_state2 = jax.random.normal(k2, (B, S, H), dtype=jnp.float32)
    labels = jax.random.randint(k3, (B,), 0, NUM_LABELS, dtype=jnp.int32)

    cls_weight = 0.02 * jax.random.normal(k4, (NUM_LABELS, 2 * H),
                                          dtype=jnp.float32)
    cls_bias = 0.01 * jax.random.normal(k5, (NUM_LABELS,), dtype=jnp.float32)

    loss, logits = keyval_linking(hidden_state1, hidden_state2, labels,
                                  cls_weight, cls_bias)
    jax.block_until_ready((loss, logits))

    ref_loss, ref_logits = _reference(hidden_state1, hidden_state2, labels,
                                      cls_weight, cls_bias)
    assert logits.shape == (B, NUM_LABELS)
    assert jnp.allclose(logits, ref_logits, atol=1e-5, rtol=1e-5)
    assert jnp.allclose(loss, ref_loss, atol=1e-5, rtol=1e-5)

    print("KERNEL_OK")
</pallas_src>

<mosaic_0001>
module attributes {stable_mosaic.version = 11 : i64} {
  func.func @keyval_kernel(%arg0: i32, %arg1: memref<8x64xf32, #tpu.memory_space<vmem>>, %arg2: memref<64x128xf32, #tpu.memory_space<vmem>>, %arg3: memref<1x128xf32, #tpu.memory_space<vmem>>, %arg4: memref<8x1xi32, #tpu.memory_space<vmem>>, %arg5: memref<8x128xf32, #tpu.memory_space<vmem>>, %arg6: memref<8x1xf32, #tpu.memory_space<vmem>>) attributes {dimension_semantics = [#tpu.dimension_semantics<parallel>], iteration_bounds = array<i64: 1>, scalar_prefetch = 0 : i64, scratch_operands = 0 : i64, tpu.core_type = #tpu.core_type<tc>, window_params = [{transform_indices = @transform_0, window_bounds = array<i64: 8, 64>}, {pipeline_mode = #tpu.pipeline_mode<synchronous>, transform_indices = @transform_1, window_bounds = array<i64: 64, 128>}, {pipeline_mode = #tpu.pipeline_mode<synchronous>, transform_indices = @transform_2, window_bounds = array<i64: 1, 128>}, {transform_indices = @transform_3, window_bounds = array<i64: 8, 1>}, {transform_indices = @transform_4, window_bounds = array<i64: 8, 128>}, {transform_indices = @transform_5, window_bounds = array<i64: 8, 1>}]} {
    %c0 = arith.constant 0 : index
    %c0_0 = arith.constant 0 : index
    %0 = vector.load %arg1[%c0, %c0_0] : memref<8x64xf32, #tpu.memory_space<vmem>>, vector<8x64xf32>
    %c0_1 = arith.constant 0 : index
    %c0_2 = arith.constant 0 : index
    %1 = vector.load %arg2[%c0_1, %c0_2] : memref<64x128xf32, #tpu.memory_space<vmem>>, vector<64x128xf32>
    %cst = arith.constant dense<0.000000e+00> : vector<8x128xf32>
    %2 = tpu.matmul %0, %1, %cst {dimension_numbers = #tpu.dot_dimension_numbers<[1], [0], [0], [1], [0, 0, 1, 1], [], []>} : vector<8x64xf32>, vector<64x128xf32>, vector<8x128xf32> -> vector<8x128xf32>
    %c0_3 = arith.constant 0 : index
    %c0_4 = arith.constant 0 : index
    %3 = vector.load %arg3[%c0_3, %c0_4] : memref<1x128xf32, #tpu.memory_space<vmem>>, vector<1x128xf32>
    %4 = vector.broadcast %3 : vector<1x128xf32> to vector<8x128xf32>
    %5 = arith.addf %2, %4 : vector<8x128xf32>
    %c0_5 = arith.constant 0 : index
    %c0_6 = arith.constant 0 : index
    %6 = vector.load %arg5[%c0_5, %c0_6] : memref<8x128xf32, #tpu.memory_space<vmem>>, vector<8x128xf32>
    tpu.vector_store %arg5[%c0_5, %c0_6], %5 {strides = array<i32>} : memref<8x128xf32, #tpu.memory_space<vmem>>, vector<8x128xf32>,
    %cst_7 = arith.constant dense<0xFF800000> : vector<8xf32>
    %7 = vector.multi_reduction <maximumf>, %5, %cst_7 [1] : vector<8x128xf32> to vector<8xf32>
    %8 = vector.shape_cast %7 : vector<8xf32> to vector<8x1xf32>
    %9 = vector.broadcast %8 : vector<8x1xf32> to vector<8x128xf32>
    %10 = arith.subf %5, %9 : vector<8x128xf32>
    %11 = math.exp %10 : vector<8x128xf32>
    %cst_8 = arith.constant dense<0.000000e+00> : vector<8xf32>
    %12 = vector.multi_reduction <add>, %11, %cst_8 [1] : vector<8x128xf32> to vector<8xf32>
    %13 = vector.shape_cast %12 : vector<8xf32> to vector<8x1xf32>
    %14 = math.log %13 : vector<8x1xf32>
    %15 = arith.addf %8, %14 : vector<8x1xf32>
    %16 = tpu.iota {dimensions = array<i32: 1>} : vector<8x128xi32>
    %c0_9 = arith.constant 0 : index
    %c0_10 = arith.constant 0 : index
    %17 = vector.load %arg4[%c0_9, %c0_10] : memref<8x1xi32, #tpu.memory_space<vmem>>, vector<8x1xi32>
    %18 = vector.broadcast %17 : vector<8x1xi32> to vector<8x128xi32>
    %19 = arith.cmpi eq, %16, %18 : vector<8x128xi32>
    %20 = arith.extui %19 : vector<8x128xi1> to vector<8x128xi32>
    %21 = arith.sitofp %20 : vector<8x128xi32> to vector<8x128xf32>
    %22 = arith.mulf %21, %5 : vector<8x128xf32>
    %cst_11 = arith.constant dense<0.000000e+00> : vector<8xf32>
    %23 = vector.multi_reduction <add>, %22, %cst_11 [1] : vector<8x128xf32> to vector<8xf32>
    %24 = vector.shape_cast %23 : vector<8xf32> to vector<8x1xf32>
    %25 = arith.subf %15, %24 : vector<8x1xf32>
    %c0_12 = arith.constant 0 : index
    %c0_13 = arith.constant 0 : index
    %26 = vector.load %arg6[%c0_12, %c0_13] : memref<8x1xf32, #tpu.memory_space<vmem>>, vector<8x1xf32>
    tpu.vector_store %arg6[%c0_12, %c0_13], %25 {strides = array<i32>} : memref<8x1xf32, #tpu.memory_space<vmem>>, vector<8x1xf32>,
    return
  }
  func.func @transform_0(%arg0: i32) -> (i32, i32) {
    %c0_i32 = arith.constant 0 : i32
    %c0_i32_0 = arith.constant 0 : i32
    return %arg0, %c0_i32 : i32, i32
  }
  func.func @transform_1(%arg0: i32) -> (i32, i32) {
    %c0_i32 = arith.constant 0 : i32
    %c0_i32_0 = arith.constant 0 : i32
    %c0_i32_1 = arith.constant 0 : i32
    return %c0_i32, %c0_i32_0 : i32, i32
  }
  func.func @transform_2(%arg0: i32) -> (i32, i32) {
    %c0_i32 = arith.constant 0 : i32
    %c0_i32_0 = arith.constant 0 : i32
    %c0_i32_1 = arith.constant 0 : i32
    return %c0_i32, %c0_i32_0 : i32, i32
  }
  func.func @transform_3(%arg0: i32) -> (i32, i32) {
    %c0_i32 = arith.constant 0 : i32
    %c0_i32_0 = arith.constant 0 : i32
    return %arg0, %c0_i32 : i32, i32
  }
  func.func @transform_4(%arg0: i32) -> (i32, i32) {
    %c0_i32 = arith.constant 0 : i32
    %c0_i32_0 = arith.constant 0 : i32
    return %arg0, %c0_i32 : i32, i32
  }
  func.func @transform_5(%arg0: i32) -> (i32, i32) {
    %c0_i32 = arith.constant 0 : i32
    %c0_i32_0 = arith.constant 0 : i32
    return %arg0, %c0_i32 : i32, i32
  }
}

</mosaic_0001>

<bundles_post_ra>
// kernel: tpu_custom_call.1
= control target key start
LH: loop header
LB: loop body
LE: loop exit
PB: predicated region body
PF: predicated region fallthrough
CT: control target
= control target key end

     0   :  { %11 = vsyncpa [#allocation3], 0  ;;  %s347_s0 = inlined_call_operand.vmem [shape: f32[8,64], index: 0, kind: input, shape index: {}]   ;;  %s348_s1 = inlined_call_operand.hbm [shape: f32[64,128], index: 1, kind: input, shape index: {}]   ;;  %s349_s2 = inlined_call_operand.vmem [shape: f32[1,128], index: 2, kind: input, shape index: {}]   ;;  %s350_s3 = inlined_call_operand.vmem [shape: s32[8,1], index: 3, kind: input, shape index: {}]   ;;  %s351_s4 = inlined_call_operand.hbm [shape: f32[8,128], index: 4, kind: output, shape index: {0}]   ;;  %s352_s5 = inlined_call_operand.vmem [shape: f32[8,1], index: 5, kind: output, shape index: {1}]  }
   0x1   :  { %12 = vsyncpa [#allocation4], 0  ;;  %s273_s18 = smov [#allocation2]   ;;  %s225_s22 = scalar_lea.hbm %s348_s1, 1024 }
   0x2   :  { %s20_s19 = sshll.u32 %s273_s18, 4  ;;  %p226_p0 = scmp.ne.s32.totalorder %s348_s1, %s225_s22  ;;  %s21_s19 = int_to_ptr.vmem [resolvable:$true] %s20_s19 }
   0x3   :  { %p229_p1 = scmp.lt.u32.totalorder %s225_s22, %s348_s1 }
   0x5   :  { %p231_p2 = pnand %p229_p1, %p226_p0 }
   0x7   :  { %234 = shalt.err (!%p231_p2)
}
   0x8   :  { %s235_s27 = scalar_lea.vmem %s21_s19, 1024  ;;  %p240_p4 = scmp.lt.s32.totalorder %s21_s19, %s21_s19 }
   0x9   :  { %p236_p3 = scmp.ne.s32.totalorder %s21_s19, %s235_s27  ;;  %p241_p5 = scmp.lt.s32.totalorder %s235_s27, %s235_s27 }
   0xb   :  { %p242_p6 = por %p241_p5, %p240_p4 }
   0xd   :  { %p243_p7 = pnand %p242_p6, %p236_p3 }
   0xf   :  { %246 = shalt.err (!%p243_p7)
}
  0x10   :  { %s274_s28 = smov 128   ;;  %s275_s29 = smov 8  }
  0x11   :  { %26 = dma.hbm_to_vmem [thread:$0]  %s348_s1, 1024, %s21_s19, [#allocation3], %s274_s28, %s274_s28, %s275_s29  }
  0x12   :  { %269 = dma.done.wait [#allocation3], 1024  }
  0x13   :  { %270 = vsyncadd [#allocation3], 4294966272  ;;  %v276_v0 = vmov 0.0|0.0   ;;  %vm277_vm0 = vmmov 0   ;;  %v278_v1 = vmov 0.0   ;;  %v35_v2 = vld [vmem:[#allocation2] sm:$0xff]  ;;  %v135_v24 = vlaneseq }
  0x14   :  { %200 = vmatprep.subr.bf16.mxu0 %v276_v0  ;;  %197 = vmatprep.mubr.msk.f32.mxu0 %vm277_vm0, %v278_v1  ;;  %v36_v3 = vld [vmem:[#allocation2 + $0x8] sm:$0xff]  ;;  %v37_v4 = vld [vmem:[#allocation2 + $0x10] sm:$0xff]  ;;  %v38_v6 = vld [vmem:[#allocation2 + $0x18] sm:$0xff]  ;;  %vm50_vm1 = vcmask 523264   ;;  %v279_v15 = vmov 0  }
  0x15   :  { %v201_v5 = vpack.c.bf16 %v36_v3, %v35_v2  ;;  %v204_v7 = vpack.c.bf16 %v38_v6, %v37_v4  ;;  %v39_v8 = vld [vmem:[#allocation2 + $0x20] sm:$0xff]  ;;  %v40_v9 = vld [vmem:[#allocation2 + $0x28] sm:$0xff]  ;;  %v41_v11 = vld [vmem:[#allocation2 + $0x30] sm:$0xff]  ;;  %220 = vset.pattern.permute.xlu0 %v279_v15  ;;  %v136_v25 = vand.u32 127, %v135_v24 }
  0x16   :  { %v207_v10 = vpack.c.bf16 %v40_v9, %v39_v8  ;;  %v42_v12 = vld [vmem:[#allocation2 + $0x38] sm:$0xff]  ;;  %v34_v14 = vld [vmem:[%s347_s0] sm:$0xff]  ;;  %s280_s0 = smov [#allocation5]  }
  0x17   :  { %202 = vmatpush3.bf16.msra.mxu0 %v201_v5  ;;  %v210_v13 = vpack.c.bf16 %v42_v12, %v41_v11  ;;  %v169_v16 = vld [vmem:[%s349_s2] ss:$0 sm:$0xff]  ;;  %s156_s2 = sshll.u32 %s280_s0, 4  ;;  %s157_s2 = int_to_ptr.vmem [resolvable:$true] %s156_s2 }
  0x18   :  { %203 = vmatprep.subr.bf16.mxu0 %v276_v0  ;;  %v137_v20 = vld [vmem:[%s350_s3] sm:$0xff]  ;;  %s247_s12 = scalar_lea.vmem %s157_s2, 128  ;;  %p252_p9 = scmp.lt.s32.totalorder %s157_s2, %s157_s2 }
  0x19   :  { %p248_p8 = scmp.ne.s32.totalorder %s157_s2, %s247_s12  ;;  %p253_p10 = scmp.lt.s32.totalorder %s247_s12, %s247_s12 }
  0x1b   :  { %205 = vmatpush3.bf16.msra.mxu0 %v204_v7  ;;  %p254_p11 = por %p253_p10, %p252_p9 }
  0x1c   :  { %206 = vmatprep.subr.bf16.mxu0 %v276_v0 }
  0x1d   :  { %p255_p12 = pnand %p254_p11, %p248_p8 }
  0x1f   :  { %208 = vmatpush3.bf16.msra.mxu0 %v207_v10 }
  0x20   :  { %209 = vmatprep.subr.bf16.mxu0 %v276_v0 }
  0x23   :  { %211 = vmatpush3.bf16.msra.mxu0 %v210_v13 }
  0x26   :  { %198 = vmatmul.mubr.msk.f32.vlgmr.msra.gmra.mrb[0].mxu0 %vm50_vm1, %v34_v14 }
  0xf9   :  { %v120_v17 = vpop.f32.mrb[0].mxu0 }
  0xfa   :  { %v121_v18 = vadd.f32 %v169_v16, %v120_v17  ;;  %v199_v19 = vpop.f32.mrb[1].mxu0 }
  0xfc   :  { %124 = vst [vmem:[#allocation5] sm:$0xff] %v121_v18  ;;  %125 = vmax.xlane.f32.xlu0 %v121_v18 }
 0x112   :  { %139 = vperm.xlu0 %220, %v137_v20  }
 0x189   :  { %v126_v21 = vpop.xlane.xlu0 %125 }
 0x18a   :  { %v127_v22 = vsub.f32 %v121_v18, %v126_v21 }
 0x18c   :  { %v128_v23 = vmul.f32 1.442695, %v127_v22 }
 0x18e   :  { %221 = vpow2.f32 %v128_v23 }
 0x191   :  { %v140_v26 = vpop.permute.xlu0 %139 }
 0x192   :  { %vm141_vm2 = vcmp.eq.s32.totalorder %v136_v25, %v140_v26 }
 0x193   :  { %v171_v28 = vsel %vm141_vm2, 1.0, %v278_v1 }
 0x194   :  { %v144_v29 = vmul.f32 %v171_v28, %v121_v18 }
 0x198   :  { %v222_v27 = vpop.eup %221 }
 0x199   :  { %130 = vadd.xlane.f32.xlu1 %v222_v27 }
 0x19d   :  { %145 = vadd.xlane.f32.xlu1 %v144_v29 }
 0x19e   :  { %258 = shalt.err (!%p255_p12)
}
 0x19f   :  { %s259_s14 = scalar_lea.hbm %s351_s4, 128 }
 0x1a0   :  { %p260_p13 = scmp.ne.s32.totalorder %s351_s4, %s259_s14  ;;  %p263_p0 = scmp.lt.u32.totalorder %s259_s14, %s351_s4 }
 0x1a2   :  { %p265_p1 = pnand %p263_p0, %p260_p13 }
 0x1a4   :  { %268 = shalt.err (!%p265_p1)
}
 0x1a5   :  { %159 = dma.vmem_to_hbm [thread:$0]  %s157_s2, 128, %s351_s4, [#allocation4]   ;;  %vm148_vm3 = vcmask 7168  }
 0x226   :  { %v131_v30 = vpop.xlane.xlu1 %130 }
 0x227   :  { %223 = vlog2.f32 %v131_v30 }
 0x22a   :  { %v146_v34 = vpop.xlane.xlu1 %145 }
 0x231   :  { %v224_v31 = vpop.eup %223 }
 0x232   :  { %v133_v32 = vmul.f32 0.6931472, %v224_v31 }
 0x234   :  { %v134_v33 = vadd.f32 %v133_v32, %v126_v21 }
 0x236   :  { %v147_v35 = vsub.f32 %v134_v33, %v146_v34 }
 0x238   :  { %149 = vst.msk [vmem:[%s352_s5] sm:$0xff] %vm148_vm3, %v147_v35 }
 0x239   :  { %271 = dma.done.wait [#allocation4], 128  }
 0x23a   :  { %272 = vsyncadd [#allocation4], 4294967168 }
 0x23b   :  { %167 = vsyncpa [#allocation3], 1 }
 0x23c   :  { %168 = vsyncpa [#allocation4], 1 }

</bundles_post_ra>
